<compile_context>
chip_gen: v6e
topology: v6e:2x2x1
jax: 0.10.0
libtpu: 0.0.40
codegen_flags: <defaults>
</compile_context>

<pallas_src>
import math
import functools

import jax
import jax.numpy as jnp
from jax.experimental import pallas as pl
from jax.experimental.pallas import tpu as pltpu

LN_EPS = 1e-5


def _round_up(a, m):
    return ((a + m - 1) // m) * m


def _encoder_kernel(x_ref, gamma_ref, beta_ref, w_ref, b_ref, o_ref,
                    *, n_layers, skip_connect, rescale, mxu_dtype):
    # x_ref: (TM, S) row tile. gamma/beta/b: (L, 1, S); w: (L, S, S) = W^T,
    # all fully resident in VMEM.
    x = x_ref[...].astype(jnp.float32)
    first_x = x
    # n_layers is small & static -> unrolled python loop.
    for l in range(n_layers):
        # LayerNorm over the hidden (lane) dim, biased variance (PyTorch).
        mu = jnp.mean(x, axis=-1, keepdims=True)
        xc = x - mu
        var = jnp.mean(xc * xc, axis=-1, keepdims=True)
        xn = xc * jax.lax.rsqrt(var + LN_EPS)
        xn = xn * gamma_ref[l] + beta_ref[l]                 # (TM,S)*(1,S)+(1,S)
        # Linear: y = xn @ W^T + b. bf16 MXU inputs, f32 accumulation.
        h = jnp.dot(xn.astype(mxu_dtype), w_ref[l].astype(mxu_dtype),
                    preferred_element_type=jnp.float32)
        h = jnp.maximum(h + b_ref[l].astype(jnp.float32), 0.0)   # bias + ReLU
        # Dropout is identity in eval mode.
        # TODO(synk): training-mode dropout (stateful PRNG mask) not implemented.
        x = x + h                                            # residual (prev_x reused as x)
        if skip_connect:
            x = rescale * (first_x + x)
    o_ref[...] = x.astype(o_ref.dtype)


def disentangled_encoder(x, gamma, beta, w_t, b, *, skip_connect=False,
                         row_tile=512, mxu_dtype=jnp.bfloat16,
                         vmem_budget_bytes=48 * 1024 * 1024):
    """x: (batch, seq, size). gamma/beta/b: (L,1,size). w_t: (L,size,size) = W^T."""
    batch, seq, size = x.shape
    n_layers = w_t.shape[0]
    rows = batch * seq
    item = x.dtype.itemsize

    # Resident weight bytes (single-buffered in VMEM).
    w_bytes = (w_t.size * w_t.dtype.itemsize
               + gamma.size * gamma.dtype.itemsize
               + beta.size * beta.dtype.itemsize
               + b.size * b.dtype.itemsize)

    def _vmem_estimate(tm):
        io = (2 + 2) * tm * size * item      # double-buffered x-in + out tiles
        live = 4 * tm * size * 4             # live f32 temps (x, first_x, xn, h)
        return io + live + w_bytes

    # Pick the row tile: as large as the request/VMEM budget allows, multiple
    # of 8 sublanes, never larger than needed.
    tm = min(row_tile, _round_up(rows, 8))
    tm = max(8, (tm // 8) * 8)
    while tm > 8 and _vmem_estimate(tm) > vmem_budget_bytes:
        tm = max(8, ((tm // 2) // 8) * 8)
    # Keep enough grid steps to feed both v7x TensorCores when work is plentiful.
    if rows >= 8 * 128 and pl.cdiv(rows, tm) < 8:
        tm = max(128, _round_up(pl.cdiv(rows, 8), 8))

    padded_rows = _round_up(rows, tm)
    x2 = x.reshape(rows, size)
    if padded_rows != rows:
        x2 = jnp.pad(x2, ((0, padded_rows - rows), (0, 0)))

    grid = (padded_rows // tm,)

    kernel = functools.partial(
        _encoder_kernel,
        n_layers=n_layers,
        skip_connect=skip_connect,
        rescale=1.0 / math.sqrt(2),
        mxu_dtype=mxu_dtype,
    )

    vmem_limit = int(min(64 * 1024 * 1024,
                         max(32 * 1024 * 1024, 2 * _vmem_estimate(tm))))

    cost = pl.CostEstimate(
        flops=int(2 * n_layers * padded_rows * size * size),
        transcendentals=int(n_layers * padded_rows),
        bytes_accessed=int(2 * padded_rows * size * item + w_bytes),
    )

    out = pl.pallas_call(
        kernel,
        out_shape=jax.ShapeDtypeStruct((padded_rows, size), x.dtype),
        grid_spec=pltpu.PrefetchScalarGridSpec(
            num_scalar_prefetch=0,
            grid=grid,
            in_specs=[
                pl.BlockSpec((tm, size), lambda i: (i, 0)),               # x rows
                pl.BlockSpec(memory_space=pltpu.MemorySpace.VMEM),        # gamma
                pl.BlockSpec(memory_space=pltpu.MemorySpace.VMEM),        # beta
                pl.BlockSpec(memory_space=pltpu.MemorySpace.VMEM),        # W^T
                pl.BlockSpec(memory_space=pltpu.MemorySpace.VMEM),        # bias
            ],
            out_specs=pl.BlockSpec((tm, size), lambda i: (i, 0)),
        ),
        compiler_params=pltpu.CompilerParams(
            dimension_semantics=("parallel",),
            vmem_limit_bytes=vmem_limit),
        cost_estimate=cost,
    )(x2, gamma, beta, w_t, b)

    if padded_rows != rows:
        out = out[:rows]
    return out.reshape(batch, seq, size)


def _reference(x, gamma, beta, w_t, b, *, skip_connect=False):
    """Pure-JAX f32 reference mirroring the PyTorch forward (eval mode)."""
    rescale = 1.0 / math.sqrt(2)
    first_x = x
    n_layers = w_t.shape[0]
    for l in range(n_layers):
        prev_x = x
        mu = jnp.mean(x, axis=-1, keepdims=True)
        var = jnp.mean((x - mu) ** 2, axis=-1, keepdims=True)
        xn = (x - mu) / jnp.sqrt(var + LN_EPS)
        xn = xn * gamma[l, 0] + beta[l, 0]
        h = xn @ w_t[l] + b[l, 0]
        h = jnp.maximum(h, 0.0)
        x = prev_x + h
        if skip_connect:
            x = rescale * (first_x + x)
    return x


def init_params(key, n_layers, size):
    """Shapes matching nn.LayerNorm(size) + nn.Linear(size, size) per layer."""
    keys = jax.random.split(key, 3 * n_layers)
    gammas, betas, ws, bs = [], [], [], []
    bound = 1.0 / math.sqrt(size)
    for l in range(n_layers):
        gammas.append(1.0 + 0.01 * jax.random.normal(keys[3 * l], (1, size)))
        betas.append(0.01 * jax.random.normal(keys[3 * l], (1, size)))
        w = jax.random.uniform(keys[3 * l + 1], (size, size),
                               minval=-bound, maxval=bound)
        ws.append(w.T)                                          # store W^T
        bs.append(jax.random.uniform(keys[3 * l + 2], (1, size),
                                     minval=-bound, maxval=bound))
    gamma = jnp.stack(gammas).astype(jnp.float32)               # (L,1,S)
    beta = jnp.stack(betas).astype(jnp.float32)                 # (L,1,S)
    w_t = jnp.stack(ws).astype(jnp.float32)                     # (L,S,S)
    b = jnp.stack(bs).astype(jnp.float32)                       # (L,1,S)
    return gamma, beta, w_t, b


if __name__ == "__main__":
    batch, seq, size = 2, 8, 32
    n_layers = 3

    key = jax.random.PRNGKey(0)
    kx, kp = jax.random.split(key)
    x = jax.random.normal(kx, (batch, seq, size), dtype=jnp.float32)
    gamma, beta, w_t, b = init_params(kp, n_layers, size)

    for skip in (False, True):
        ref = _reference(x, gamma, beta, w_t, b, skip_connect=skip)

        # Exact path: f32 MXU inputs -> tight tolerance.
        out_f32 = disentangled_encoder(x, gamma, beta, w_t, b,
                                       skip_connect=skip,
                                       mxu_dtype=jnp.float32)
        out_f32 = jax.block_until_ready(out_f32)
        assert out_f32.shape == (batch, seq, size)
        assert jnp.allclose(out_f32, ref, atol=1e-4, rtol=1e-4), (
            f"f32 path max abs err {jnp.max(jnp.abs(out_f32 - ref))}")

        # Default fast path: bf16 MXU inputs, f32 accumulation -> loose tolerance.
        out_bf = disentangled_encoder(x, gamma, beta, w_t, b, skip_connect=skip)
        out_bf = jax.block_until_ready(out_bf)
        assert jnp.allclose(out_bf, ref, atol=5e-2, rtol=5e-2), (
            f"bf16 path max abs err {jnp.max(jnp.abs(out_bf - ref))}")

    # Exercise the row-padding path (rows not a multiple of the sublane tile).
    xb = jax.random.normal(jax.random.PRNGKey(1), (3, 7, size), dtype=jnp.float32)
    out_pad = jax.block_until_ready(
        disentangled_encoder(xb, gamma, beta, w_t, b, skip_connect=True))
    ref_pad = _reference(xb, gamma, beta, w_t, b, skip_connect=True)
    assert out_pad.shape == xb.shape
    assert jnp.allclose(out_pad, ref_pad, atol=5e-2, rtol=5e-2), (
        f"padded path max abs err {jnp.max(jnp.abs(out_pad - ref_pad))}")

    print("KERNEL_OK")
</pallas_src>

<mosaic_0001>
module attributes {stable_mosaic.version = 11 : i64} {
  func.func @_encoder_kernel(%arg0: i32, %arg1: memref<16x32xf32, #tpu.memory_space<vmem>>, %arg2: memref<3x1x32xf32, #tpu.memory_space<vmem>>, %arg3: memref<3x1x32xf32, #tpu.memory_space<vmem>>, %arg4: memref<3x32x32xf32, #tpu.memory_space<vmem>>, %arg5: memref<3x1x32xf32, #tpu.memory_space<vmem>>, %arg6: memref<16x32xf32, #tpu.memory_space<vmem>>) attributes {dimension_semantics = [#tpu.dimension_semantics<parallel>], iteration_bounds = array<i64: 1>, scalar_prefetch = 0 : i64, scratch_operands = 0 : i64, tpu.core_type = #tpu.core_type<tc>, window_params = [{transform_indices = @transform_0, window_bounds = array<i64: 16, 32>}, {pipeline_mode = #tpu.pipeline_mode<synchronous>, transform_indices = @transform_1, window_bounds = array<i64: 3, 1, 32>}, {pipeline_mode = #tpu.pipeline_mode<synchronous>, transform_indices = @transform_2, window_bounds = array<i64: 3, 1, 32>}, {pipeline_mode = #tpu.pipeline_mode<synchronous>, transform_indices = @transform_3, window_bounds = array<i64: 3, 32, 32>}, {pipeline_mode = #tpu.pipeline_mode<synchronous>, transform_indices = @transform_4, window_bounds = array<i64: 3, 1, 32>}, {transform_indices = @transform_5, window_bounds = array<i64: 16, 32>}]} {
    %c0 = arith.constant 0 : index
    %c0_0 = arith.constant 0 : index
    %0 = vector.load %arg1[%c0, %c0_0] : memref<16x32xf32, #tpu.memory_space<vmem>>, vector<16x32xf32>
    %cst = arith.constant dense<0.000000e+00> : vector<16xf32>
    %1 = vector.multi_reduction <add>, %0, %cst [1] : vector<16x32xf32> to vector<16xf32>
    %2 = vector.shape_cast %1 : vector<16xf32> to vector<16x1xf32>
    %cst_1 = arith.constant 3.200000e+01 : f32
    %3 = vector.broadcast %cst_1 : f32 to vector<16x1xf32>
    %4 = arith.divf %2, %3 : vector<16x1xf32>
    %5 = vector.broadcast %4 : vector<16x1xf32> to vector<16x32xf32>
    %6 = arith.subf %0, %5 : vector<16x32xf32>
    %7 = arith.mulf %6, %6 : vector<16x32xf32>
    %cst_2 = arith.constant dense<0.000000e+00> : vector<16xf32>
    %8 = vector.multi_reduction <add>, %7, %cst_2 [1] : vector<16x32xf32> to vector<16xf32>
    %9 = vector.shape_cast %8 : vector<16xf32> to vector<16x1xf32>
    %cst_3 = arith.constant 3.200000e+01 : f32
    %10 = vector.broadcast %cst_3 : f32 to vector<16x1xf32>
    %11 = arith.divf %9, %10 : vector<16x1xf32>
    %cst_4 = arith.constant 9.99999974E-6 : f32
    %12 = vector.broadcast %cst_4 : f32 to vector<16x1xf32>
    %13 = arith.addf %11, %12 : vector<16x1xf32>
    %14 = math.rsqrt %13 : vector<16x1xf32>
    %15 = vector.broadcast %14 : vector<16x1xf32> to vector<16x32xf32>
    %16 = arith.mulf %6, %15 : vector<16x32xf32>
    %c0_5 = arith.constant 0 : index
    %c0_6 = arith.constant 0 : index
    %c0_7 = arith.constant 0 : index
    %17 = vector.load %arg2[%c0_5, %c0_6, %c0_7] : memref<3x1x32xf32, #tpu.memory_space<vmem>>, vector<1x1x32xf32>
    %18 = vector.shape_cast %17 : vector<1x1x32xf32> to vector<1x32xf32>
    %19 = vector.broadcast %18 : vector<1x32xf32> to vector<16x32xf32>
    %20 = arith.mulf %16, %19 : vector<16x32xf32>
    %c0_8 = arith.constant 0 : index
    %c0_9 = arith.constant 0 : index
    %c0_10 = arith.constant 0 : index
    %21 = vector.load %arg3[%c0_8, %c0_9, %c0_10] : memref<3x1x32xf32, #tpu.memory_space<vmem>>, vector<1x1x32xf32>
    %22 = vector.shape_cast %21 : vector<1x1x32xf32> to vector<1x32xf32>
    %23 = vector.broadcast %22 : vector<1x32xf32> to vector<16x32xf32>
    %24 = arith.addf %20, %23 : vector<16x32xf32>
    %c0_11 = arith.constant 0 : index
    %c0_12 = arith.constant 0 : index
    %c0_13 = arith.constant 0 : index
    %25 = vector.load %arg4[%c0_11, %c0_12, %c0_13] : memref<3x32x32xf32, #tpu.memory_space<vmem>>, vector<1x32x32xf32>
    %26 = vector.shape_cast %25 : vector<1x32x32xf32> to vector<32x32xf32>
    %cst_14 = arith.constant dense<0.000000e+00> : vector<16x32xf32>
    %27 = tpu.matmul %24, %26, %cst_14 {dimension_numbers = #tpu.dot_dimension_numbers<[1], [0], [0], [1], [0, 0, 1, 1], [], []>} : vector<16x32xf32>, vector<32x32xf32>, vector<16x32xf32> -> vector<16x32xf32>
    %c0_15 = arith.constant 0 : index
    %c0_16 = arith.constant 0 : index
    %c0_17 = arith.constant 0 : index
    %28 = vector.load %arg5[%c0_15, %c0_16, %c0_17] : memref<3x1x32xf32, #tpu.memory_space<vmem>>, vector<1x1x32xf32>
    %29 = vector.shape_cast %28 : vector<1x1x32xf32> to vector<1x32xf32>
    %30 = vector.broadcast %29 : vector<1x32xf32> to vector<16x32xf32>
    %31 = arith.addf %27, %30 : vector<16x32xf32>
    %cst_18 = arith.constant 0.000000e+00 : f32
    %32 = vector.broadcast %cst_18 : f32 to vector<16x32xf32>
    %33 = arith.maximumf %31, %32 : vector<16x32xf32>
    %34 = arith.addf %0, %33 : vector<16x32xf32>
    %cst_19 = arith.constant dense<0.000000e+00> : vector<16xf32>
    %35 = vector.multi_reduction <add>, %34, %cst_19 [1] : vector<16x32xf32> to vector<16xf32>
    %36 = vector.shape_cast %35 : vector<16xf32> to vector<16x1xf32>
    %cst_20 = arith.constant 3.200000e+01 : f32
    %37 = vector.broadcast %cst_20 : f32 to vector<16x1xf32>
    %38 = arith.divf %36, %37 : vector<16x1xf32>
    %39 = vector.broadcast %38 : vector<16x1xf32> to vector<16x32xf32>
    %40 = arith.subf %34, %39 : vector<16x32xf32>
    %41 = arith.mulf %40, %40 : vector<16x32xf32>
    %cst_21 = arith.constant dense<0.000000e+00> : vector<16xf32>
    %42 = vector.multi_reduction <add>, %41, %cst_21 [1] : vector<16x32xf32> to vector<16xf32>
    %43 = vector.shape_cast %42 : vector<16xf32> to vector<16x1xf32>
    %cst_22 = arith.constant 3.200000e+01 : f32
    %44 = vector.broadcast %cst_22 : f32 to vector<16x1xf32>
    %45 = arith.divf %43, %44 : vector<16x1xf32>
    %cst_23 = arith.constant 9.99999974E-6 : f32
    %46 = vector.broadcast %cst_23 : f32 to vector<16x1xf32>
    %47 = arith.addf %45, %46 : vector<16x1xf32>
    %48 = math.rsqrt %47 : vector<16x1xf32>
    %49 = vector.broadcast %48 : vector<16x1xf32> to vector<16x32xf32>
    %50 = arith.mulf %40, %49 : vector<16x32xf32>
    %c1 = arith.constant 1 : index
    %c0_24 = arith.constant 0 : index
    %c0_25 = arith.constant 0 : index
    %51 = vector.load %arg2[%c1, %c0_24, %c0_25] : memref<3x1x32xf32, #tpu.memory_space<vmem>>, vector<1x1x32xf32>
    %52 = vector.shape_cast %51 : vector<1x1x32xf32> to vector<1x32xf32>
    %53 = vector.broadcast %52 : vector<1x32xf32> to vector<16x32xf32>
    %54 = arith.mulf %50, %53 : vector<16x32xf32>
    %c1_26 = arith.constant 1 : index
    %c0_27 = arith.constant 0 : index
    %c0_28 = arith.constant 0 : index
    %55 = vector.load %arg3[%c1_26, %c0_27, %c0_28] : memref<3x1x32xf32, #tpu.memory_space<vmem>>, vector<1x1x32xf32>
    %56 = vector.shape_cast %55 : vector<1x1x32xf32> to vector<1x32xf32>
    %57 = vector.broadcast %56 : vector<1x32xf32> to vector<16x32xf32>
    %58 = arith.addf %54, %57 : vector<16x32xf32>
    %c1_29 = arith.constant 1 : index
    %c0_30 = arith.constant 0 : index
    %c0_31 = arith.constant 0 : index
    %59 = vector.load %arg4[%c1_29, %c0_30, %c0_31] : memref<3x32x32xf32, #tpu.memory_space<vmem>>, vector<1x32x32xf32>
    %60 = vector.shape_cast %59 : vector<1x32x32xf32> to vector<32x32xf32>
    %cst_32 = arith.constant dense<0.000000e+00> : vector<16x32xf32>
    %61 = tpu.matmul %58, %60, %cst_32 {dimension_numbers = #tpu.dot_dimension_numbers<[1], [0], [0], [1], [0, 0, 1, 1], [], []>} : vector<16x32xf32>, vector<32x32xf32>, vector<16x32xf32> -> vector<16x32xf32>
    %c1_33 = arith.constant 1 : index
    %c0_34 = arith.constant 0 : index
    %c0_35 = arith.constant 0 : index
    %62 = vector.load %arg5[%c1_33, %c0_34, %c0_35] : memref<3x1x32xf32, #tpu.memory_space<vmem>>, vector<1x1x32xf32>
    %63 = vector.shape_cast %62 : vector<1x1x32xf32> to vector<1x32xf32>
    %64 = vector.broadcast %63 : vector<1x32xf32> to vector<16x32xf32>
    %65 = arith.addf %61, %64 : vector<16x32xf32>
    %cst_36 = arith.constant 0.000000e+00 : f32
    %66 = vector.broadcast %cst_36 : f32 to vector<16x32xf32>
    %67 = arith.maximumf %65, %66 : vector<16x32xf32>
    %68 = arith.addf %34, %67 : vector<16x32xf32>
    %cst_37 = arith.constant dense<0.000000e+00> : vector<16xf32>
    %69 = vector.multi_reduction <add>, %68, %cst_37 [1] : vector<16x32xf32> to vector<16xf32>
    %70 = vector.shape_cast %69 : vector<16xf32> to vector<16x1xf32>
    %cst_38 = arith.constant 3.200000e+01 : f32
    %71 = vector.broadcast %cst_38 : f32 to vector<16x1xf32>
    %72 = arith.divf %70, %71 : vector<16x1xf32>
    %73 = vector.broadcast %72 : vector<16x1xf32> to vector<16x32xf32>
    %74 = arith.subf %68, %73 : vector<16x32xf32>
    %75 = arith.mulf %74, %74 : vector<16x32xf32>
    %cst_39 = arith.constant dense<0.000000e+00> : vector<16xf32>
    %76 = vector.multi_reduction <add>, %75, %cst_39 [1] : vector<16x32xf32> to vector<16xf32>
    %77 = vector.shape_cast %76 : vector<16xf32> to vector<16x1xf32>
    %cst_40 = arith.constant 3.200000e+01 : f32
    %78 = vector.broadcast %cst_40 : f32 to vector<16x1xf32>
    %79 = arith.divf %77, %78 : vector<16x1xf32>
    %cst_41 = arith.constant 9.99999974E-6 : f32
    %80 = vector.broadcast %cst_41 : f32 to vector<16x1xf32>
    %81 = arith.addf %79, %80 : vector<16x1xf32>
    %82 = math.rsqrt %81 : vector<16x1xf32>
    %83 = vector.broadcast %82 : vector<16x1xf32> to vector<16x32xf32>
    %84 = arith.mulf %74, %83 : vector<16x32xf32>
    %c2 = arith.constant 2 : index
    %c0_42 = arith.constant 0 : index
    %c0_43 = arith.constant 0 : index
    %85 = vector.load %arg2[%c2, %c0_42, %c0_43] : memref<3x1x32xf32, #tpu.memory_space<vmem>>, vector<1x1x32xf32>
    %86 = vector.shape_cast %85 : vector<1x1x32xf32> to vector<1x32xf32>
    %87 = vector.broadcast %86 : vector<1x32xf32> to vector<16x32xf32>
    %88 = arith.mulf %84, %87 : vector<16x32xf32>
    %c2_44 = arith.constant 2 : index
    %c0_45 = arith.constant 0 : index
    %c0_46 = arith.constant 0 : index
    %89 = vector.load %arg3[%c2_44, %c0_45, %c0_46] : memref<3x1x32xf32, #tpu.memory_space<vmem>>, vector<1x1x32xf32>
    %90 = vector.shape_cast %89 : vector<1x1x32xf32> to vector<1x32xf32>
    %91 = vector.broadcast %90 : vector<1x32xf32> to vector<16x32xf32>
    %92 = arith.addf %88, %91 : vector<16x32xf32>
    %c2_47 = arith.constant 2 : index
    %c0_48 = arith.constant 0 : index
    %c0_49 = arith.constant 0 : index
    %93 = vector.load %arg4[%c2_47, %c0_48, %c0_49] : memref<3x32x32xf32, #tpu.memory_space<vmem>>, vector<1x32x32xf32>
    %94 = vector.shape_cast %93 : vector<1x32x32xf32> to vector<32x32xf32>
    %cst_50 = arith.constant dense<0.000000e+00> : vector<16x32xf32>
    %95 = tpu.matmul %92, %94, %cst_50 {dimension_numbers = #tpu.dot_dimension_numbers<[1], [0], [0], [1], [0, 0, 1, 1], [], []>} : vector<16x32xf32>, vector<32x32xf32>, vector<16x32xf32> -> vector<16x32xf32>
    %c2_51 = arith.constant 2 : index
    %c0_52 = arith.constant 0 : index
    %c0_53 = arith.constant 0 : index
    %96 = vector.load %arg5[%c2_51, %c0_52, %c0_53] : memref<3x1x32xf32, #tpu.memory_space<vmem>>, vector<1x1x32xf32>
    %97 = vector.shape_cast %96 : vector<1x1x32xf32> to vector<1x32xf32>
    %98 = vector.broadcast %97 : vector<1x32xf32> to vector<16x32xf32>
    %99 = arith.addf %95, %98 : vector<16x32xf32>
    %cst_54 = arith.constant 0.000000e+00 : f32
    %100 = vector.broadcast %cst_54 : f32 to vector<16x32xf32>
    %101 = arith.maximumf %99, %100 : vector<16x32xf32>
    %102 = arith.addf %68, %101 : vector<16x32xf32>
    %c0_55 = arith.constant 0 : index
    %c0_56 = arith.constant 0 : index
    %103 = vector.load %arg6[%c0_55, %c0_56] : memref<16x32xf32, #tpu.memory_space<vmem>>, vector<16x32xf32>
    tpu.vector_store %arg6[%c0_55, %c0_56], %102 {strides = array<i32>} : memref<16x32xf32, #tpu.memory_space<vmem>>, vector<16x32xf32>,
    return
  }
  func.func @transform_0(%arg0: i32) -> (i32, i32) {
    %c0_i32 = arith.constant 0 : i32
    %c0_i32_0 = arith.constant 0 : i32
    return %arg0, %c0_i32 : i32, i32
  }
  func.func @transform_1(%arg0: i32) -> (i32, i32, i32) {
    %c0_i32 = arith.constant 0 : i32
    %c0_i32_0 = arith.constant 0 : i32
    %c0_i32_1 = arith.constant 0 : i32
    %c0_i32_2 = arith.constant 0 : i32
    return %c0_i32, %c0_i32_0, %c0_i32_1 : i32, i32, i32
  }
  func.func @transform_2(%arg0: i32) -> (i32, i32, i32) {
    %c0_i32 = arith.constant 0 : i32
    %c0_i32_0 = arith.constant 0 : i32
    %c0_i32_1 = arith.constant 0 : i32
    %c0_i32_2 = arith.constant 0 : i32
    return %c0_i32, %c0_i32_0, %c0_i32_1 : i32, i32, i32
  }
  func.func @transform_3(%arg0: i32) -> (i32, i32, i32) {
    %c0_i32 = arith.constant 0 : i32
    %c0_i32_0 = arith.constant 0 : i32
    %c0_i32_1 = arith.constant 0 : i32
    %c0_i32_2 = arith.constant 0 : i32
    return %c0_i32, %c0_i32_0, %c0_i32_1 : i32, i32, i32
  }
  func.func @transform_4(%arg0: i32) -> (i32, i32, i32) {
    %c0_i32 = arith.constant 0 : i32
    %c0_i32_0 = arith.constant 0 : i32
    %c0_i32_1 = arith.constant 0 : i32
    %c0_i32_2 = arith.constant 0 : i32
    return %c0_i32, %c0_i32_0, %c0_i32_1 : i32, i32, i32
  }
  func.func @transform_5(%arg0: i32) -> (i32, i32) {
    %c0_i32 = arith.constant 0 : i32
    %c0_i32_0 = arith.constant 0 : i32
    return %arg0, %c0_i32 : i32, i32
  }
}

</mosaic_0001>

<bundles_post_ra>
// kernel: tpu_custom_call.1
= control target key start
LH: loop header
LB: loop body
LE: loop exit
PB: predicated region body
PF: predicated region fallthrough
CT: control target
= control target key end

     0   :  { %10 = vsyncpa [#allocation3], 0  ;;  %s787_s0 = inlined_call_operand.hbm [shape: f32[16,32], index: 0, kind: input, shape index: {}]   ;;  %s788_s1 = inlined_call_operand.hbm [shape: f32[3,1,32], index: 1, kind: input, shape index: {}]   ;;  %s789_s2 = inlined_call_operand.vmem [shape: f32[3,1,32], index: 2, kind: input, shape index: {}]   ;;  %s790_s3 = inlined_call_operand.hbm [shape: f32[3,32,32], index: 3, kind: input, shape index: {}]   ;;  %s791_s4 = inlined_call_operand.vmem [shape: f32[3,1,32], index: 4, kind: input, shape index: {}]   ;;  %s792_s5 = inlined_call_operand.hbm [shape: f32[16,32], index: 5, kind: output, shape index: {}]  }
   0x1   :  { %11 = vsyncpa [#allocation6], 0 }
   0x2   :  { %12 = vsyncpa [#allocation4], 0  ;;  %s690_s18 = smov [#allocation5]  }
   0x3   :  { %s30_s19 = sshll.u32 %s690_s18, 4  ;;  %s31_s19 = int_to_ptr.vmem [resolvable:$true] %s30_s19 }
   0x4   :  { %s612_s20 = scalar_lea.vmem %s31_s19, 48  ;;  %s616_s21 = scalar_lea.vmem %s31_s19, 64 }
   0x5   :  { %p613_p0 = scmp.ne.s32.totalorder %s31_s19, %s612_s20  ;;  %p617_p1 = scmp.lt.s32.totalorder %s31_s19, %s31_s19 }
   0x6   :  { %p618_p2 = scmp.lt.s32.totalorder %s616_s21, %s612_s20 }
   0x8   :  { %p619_p3 = por %p618_p2, %p617_p1 }
   0xa   :  { %p620_p4 = pnand %p619_p3, %p613_p0 }
   0xc   :  { %623 = shalt.err (!%p620_p4)
}
   0xd   :  { %s691_s22 = smov 16   ;;  %s692_s23 = smov 1  }
   0xe   :  { %36 = dma.hbm_to_vmem [thread:$0]  %s788_s1, 48, %s31_s19, [#allocation6], %s691_s22, %s691_s22, %s692_s23  }
   0xf   :  { %s693_s26 = smov [#allocation2]  }
  0x10   :  { %s18_s27 = sshll.u32 %s693_s26, 4  ;;  %s19_s27 = int_to_ptr.vmem [resolvable:$true] %s18_s27 }
  0x11   :  { %s632_s28 = scalar_lea.vmem %s19_s27, 256  ;;  %p637_p6 = scmp.lt.s32.totalorder %s19_s27, %s19_s27 }
  0x12   :  { %p633_p5 = scmp.ne.s32.totalorder %s19_s27, %s632_s28  ;;  %p638_p7 = scmp.lt.s32.totalorder %s632_s28, %s632_s28 }
  0x14   :  { %p639_p8 = por %p638_p7, %p637_p6 }
  0x16   :  { %p640_p9 = pnand %p639_p8, %p633_p5 }
  0x18   :  { %643 = shalt.err (!%p640_p9)
}
  0x19   :  { %s694_s29 = smov 128   ;;  %s695_s30 = smov 8  }
  0x1a   :  { %24 = dma.hbm_to_vmem [thread:$0]  %s787_s0, 256, %s19_s27, [#allocation3], %s694_s29, %s694_s29, %s695_s30  }
  0x1b   :  { %s696_s1 = smov [#allocation7]  }
  0x1c   :  { %s44_s8 = sshll.u32 %s696_s1, 4  ;;  %s45_s8 = int_to_ptr.vmem [resolvable:$true] %s44_s8 }
  0x1d   :  { %s652_s9 = scalar_lea.vmem %s45_s8, 1536  ;;  %p657_p11 = scmp.lt.s32.totalorder %s45_s8, %s45_s8 }
  0x1e   :  { %p653_p10 = scmp.ne.s32.totalorder %s45_s8, %s652_s9  ;;  %p658_p12 = scmp.lt.s32.totalorder %s652_s9, %s652_s9 }
  0x20   :  { %p659_p13 = por %p658_p12, %p657_p11 }
  0x22   :  { %p660_p0 = pnand %p659_p13, %p653_p10 }
  0x24   :  { %663 = shalt.err (!%p660_p0)
}
  0x25   :  { %50 = dma.hbm_to_vmem [thread:$0]  %s790_s3, 1536, %s45_s8, [#allocation6], %s694_s29, %s694_s29, %s695_s30  }
  0x26   :  { %684 = dma.done.wait [#allocation3], 256  }
  0x27   :  { %685 = vsyncadd [#allocation3], 4294967040 }
  0x28   :  { %686 = dma.done.wait [#allocation6], 1584  }
  0x29   :  { %687 = vsyncadd [#allocation6], 4294965712  ;;  %vm64_vm0 = vcmask 261120   ;;  %v62_v0 = vld [vmem:[#allocation2] sm:$0xff]  ;;  %v63_v1 = vld [vmem:[#allocation2 + $0x8] sm:$0xff]  ;;  %s697_s22 = smov [#allocation8]  }
  0x2a   :  { %v65_v2 = vsel %vm64_vm0, %v62_v0, 0.0  ;;  %v68_v3 = vsel %vm64_vm0, %v63_v1, 0.0  ;;  %v113_v14 = vld [vmem:[#allocation7 + $0x18] sm:$0xff]  ;;  %v112_v15 = vld [vmem:[#allocation7 + $0x10] sm:$0xff]  ;;  %v111_v16 = vld [vmem:[#allocation7 + $0x8] sm:$0xff]  ;;  %s501_s23 = sshll.u32 %s697_s22, 4  ;;  %s502_s23 = int_to_ptr.vmem [resolvable:$true] %s501_s23 }
  0x2b   :  { %66 = vadd.xlane.f32.xlu0 %v65_v2  ;;  %551 = vmatprep.subr.mxu0 %v113_v14  ;;  %v110_v17 = vld [vmem:[#allocation7] sm:$0xff]  ;;  %v514_v25 = vld [vmem:[#allocation5] ss:$0 sm:$0xff]  ;;  %v515_v27 = vld [vmem:[%s789_s2] ss:$0 sm:$0xff]  ;;  %p669_p2 = scmp.lt.s32.totalorder %s502_s23, %s502_s23 }
  0x2c   :  { %552 = vmatpush3.msra.mxu0 %v113_v14  ;;  %v516_v34 = vld [vmem:[%s791_s4] ss:$0 sm:$0xff]  ;;  %v256_v55 = vld [vmem:[#allocation7 + $0x38] sm:$0xff]  ;;  %v255_v56 = vld [vmem:[#allocation7 + $0x30] sm:$0xff] }
  0x2d   :  { %553 = vmatprep.subr.mxu0 %v112_v15  ;;  %562 = vmatprep.subr.mxu1 %v256_v55  ;;  %v254_v57 = vld [vmem:[#allocation7 + $0x28] sm:$0xff]  ;;  %v253_v58 = vld [vmem:[#allocation7 + $0x20] sm:$0xff] }
  0x2e   :  { %554 = vmatpush3.msra.mxu0 %v112_v15  ;;  %563 = vmatpush3.msra.mxu1 %v256_v55 }
  0x2f   :  { %69 = vadd.xlane.f32.xlu0 %v68_v3  ;;  %555 = vmatprep.subr.mxu0 %v111_v16  ;;  %v519_v3 = vld [vmem:[#allocation5 + $0x1] ss:$0 sm:$0xff] }
  0x30   :  { %556 = vmatpush3.msra.mxu0 %v111_v16  ;;  %564 = vmatprep.subr.mxu1 %v255_v56 }
  0x31   :  { %557 = vmatprep.subr.mxu0 %v110_v17  ;;  %565 = vmatpush3.msra.mxu1 %v255_v56 }
  0x32   :  { %558 = vmatpush3.msra.mxu0 %v110_v17  ;;  %566 = vmatprep.subr.mxu1 %v254_v57 }
  0x33   :  { %567 = vmatpush3.msra.mxu1 %v254_v57 }
  0x34   :  { %568 = vmatprep.subr.mxu1 %v253_v58 }
  0x35   :  { %569 = vmatpush3.msra.mxu1 %v253_v58 }
  0xb4   :  { %v67_v4 = vpop.xlane.xlu0 %66 }
  0xb5   :  { %v72_v5 = vmul.f32 0.03125, %v67_v4 }
  0xb7   :  { %v74_v6 = vsub.f32 %v62_v0, %v72_v5 }
  0xb8   :  { %v70_v7 = vpop.xlane.xlu0 %69 }
  0xb9   :  { %v73_v8 = vmul.f32 0.03125, %v70_v7  ;;  %v76_v9 = vmul.f32 %v74_v6, %v74_v6 }
  0xbb   :  { %v75_v10 = vsub.f32 %v63_v1, %v73_v8  ;;  %v78_v11 = vsel %vm64_vm0, %v76_v9, 0.0  ;;  %v521_v8 = vld [vmem:[%s789_s2 + $0x1] ss:$0 sm:$0xff] }
  0xbc   :  { %79 = vadd.xlane.f32.xlu1 %v78_v11  ;;  %v523_v11 = vld [vmem:[%s791_s4 + $0x1] ss:$0 sm:$0xff] }
  0xbd   :  { %v77_v12 = vmul.f32 %v75_v10, %v75_v10 }
  0xbf   :  { %v81_v13 = vsel %vm64_vm0, %v77_v12, 0.0 }
  0xc0   :  { %82 = vadd.xlane.f32.xlu1 %v81_v13 }
 0x145   :  { %v80_v18 = vpop.xlane.xlu1 %79 }
 0x146   :  { %v84_v19 = vmul.f32 0.03125, %v80_v18 }
 0x148   :  { %v86_v20 = vadd.f32 1e-05, %v84_v19 }
 0x149   :  { %v83_v21 = vpop.xlane.xlu1 %82 }
 0x14a   :  { %592 = vrsqrt.f32 %v86_v20  ;;  %v85_v22 = vmul.f32 0.03125, %v83_v21 }
 0x14c   :  { %v87_v23 = vadd.f32 1e-05, %v85_v22 }
 0x14e   :  { %594 = vrsqrt.f32 %v87_v23 }
 0x157   :  { %v593_v24 = vpop.eup %592 }
 0x158   :  { %v90_v26 = vmul.f32 %v593_v24, %v74_v6 }
 0x15a   :  { %v99_v28 = vmul.f32 %v514_v25, %v90_v26 }
 0x15b   :  { %v595_v29 = vpop.eup %594 }
 0x15c   :  { %v91_v30 = vmul.f32 %v595_v29, %v75_v10  ;;  %v108_v31 = vadd.f32 %v515_v27, %v99_v28 }
 0x15e   :  { %v100_v32 = vmul.f32 %v514_v25, %v91_v30  ;;  %559 = vmatprep.mubr.msk.f32.mxu0 %vm64_vm0, %v108_v31 }
 0x160   :  { %v109_v33 = vadd.f32 %v515_v27, %v100_v32  ;;  %v400_v32 = vld [vmem:[#allocation7 + $0x58] sm:$0xff] }
 0x161   :  { %573 = vmatprep.subr.mxu0 %v400_v32 }
 0x162   :  { %560 = vmatmul.mubr.msk.f32.vlgmr.msra.gmra.mxu0 %vm64_vm0, %v109_v33  ;;  %v399_v33 = vld [vmem:[#allocation7 + $0x50] sm:$0xff] }
 0x163   :  { %574 = vmatpush3.msra.mxu0 %v400_v32 }
 0x164   :  { %575 = vmatprep.subr.mxu0 %v399_v33 }
 0x165   :  { %576 = vmatpush3.msra.mxu0 %v399_v33 }
 0x222   :  { %v561_v35 = vpop.f32.mrf.mxu0 }
 0x223   :  { %v199_v36 = vadd.f32 %v561_v35, %v516_v34  ;;  %v397_v35 = vld [vmem:[#allocation7 + $0x40] sm:$0xff] }
 0x224   :  { %v193_v37 = vpop.f32.mrf.mxu0 }
 0x225   :  { %v203_v38 = vmax.f32 %v199_v36, 0.0  ;;  %v194_v39 = vadd.f32 %v516_v34, %v193_v37  ;;  %v398_v34 = vld [vmem:[#allocation7 + $0x48] sm:$0xff] }
 0x226   :  { %577 = vmatprep.subr.mxu0 %v398_v34 }
 0x227   :  { %v205_v40 = vadd.f32 %v203_v38, %v63_v1  ;;  %v202_v41 = vmax.f32 %v194_v39, 0.0  ;;  %578 = vmatpush3.msra.mxu0 %v398_v34 }
 0x228   :  { %579 = vmatprep.subr.mxu0 %v397_v35 }
 0x229   :  { %v204_v42 = vadd.f32 %v202_v41, %v62_v0  ;;  %v209_v43 = vsel %vm64_vm0, %v205_v40, 0.0  ;;  %580 = vmatpush3.msra.mxu0 %v397_v35 }
 0x22a   :  { %210 = vadd.xlane.f32.xlu1 %v209_v43 }
 0x22b   :  { %v206_v44 = vsel %vm64_vm0, %v204_v42, 0.0 }
 0x22c   :  { %207 = vadd.xlane.f32.xlu0 %v206_v44  ;;  %v526_v44 = vld [vmem:[#allocation5 + $0x2] ss:$0 sm:$0xff] }
 0x2b3   :  { %v211_v45 = vpop.xlane.xlu1 %210 }
 0x2b4   :  { %v213_v46 = vmul.f32 0.03125, %v211_v45 }
 0x2b5   :  { %v208_v47 = vpop.xlane.xlu0 %207 }
 0x2b6   :  { %v215_v48 = vsub.f32 %v205_v40, %v213_v46  ;;  %v212_v49 = vmul.f32 0.03125, %v208_v47 }
 0x2b8   :  { %v214_v50 = vsub.f32 %v204_v42, %v212_v49  ;;  %v217_v51 = vmul.f32 %v215_v48, %v215_v48  ;;  %v528_v49 = vld [vmem:[%s789_s2 + $0x2] ss:$0 sm:$0xff]  ;;  %s664_s2 = scalar_lea.vmem %s502_s23, 256 }
 0x2b9   :  { %p665_p1 = scmp.ne.s32.totalorder %s502_s23, %s664_s2  ;;  %p670_p3 = scmp.lt.s32.totalorder %s664_s2, %s664_s2 }
 0x2ba   :  { %v221_v52 = vsel %vm64_vm0, %v217_v51, 0.0  ;;  %v216_v53 = vmul.f32 %v214_v50, %v214_v50 }
 0x2bb   :  { %222 = vadd.xlane.f32.xlu1 %v221_v52  ;;  %v530_v52 = vld [vmem:[%s791_s4 + $0x2] ss:$0 sm:$0xff]  ;;  %p671_p4 = por %p670_p3, %p669_p2 }
 0x2bc   :  { %v218_v54 = vsel %vm64_vm0, %v216_v53, 0.0 }
 0x2bd   :  { %219 = vadd.xlane.f32.xlu0 %v218_v54  ;;  %p672_p5 = pnand %p671_p4, %p665_p1 }
 0x344   :  { %v223_v59 = vpop.xlane.xlu1 %222 }
 0x345   :  { %v225_v60 = vmul.f32 0.03125, %v223_v59 }
 0x346   :  { %v220_v61 = vpop.xlane.xlu0 %219 }
 0x347   :  { %v227_v62 = vadd.f32 1e-05, %v225_v60  ;;  %v224_v63 = vmul.f32 0.03125, %v220_v61 }
 0x349   :  { %596 = vrsqrt.f32 %v227_v62  ;;  %v226_v0 = vadd.f32 1e-05, %v224_v63 }
 0x34b   :  { %598 = vrsqrt.f32 %v226_v0 }
 0x356   :  { %v597_v1 = vpop.eup %596 }
 0x357   :  { %v231_v2 = vmul.f32 %v597_v1, %v215_v48 }
 0x358   :  { %v599_v4 = vpop.eup %598 }
 0x359   :  { %v230_v5 = vmul.f32 %v599_v4, %v214_v50  ;;  %v241_v6 = vmul.f32 %v519_v3, %v231_v2 }
 0x35b   :  { %v240_v7 = vmul.f32 %v519_v3, %v230_v5  ;;  %v251_v10 = vadd.f32 %v521_v8, %v241_v6 }
 0x35d   :  { %v250_v9 = vadd.f32 %v521_v8, %v240_v7 }
 0x35f   :  { %570 = vmatprep.mubr.msk.f32.mxu1 %vm64_vm0, %v250_v9 }
 0x360   :  { %571 = vmatmul.mubr.msk.f32.vlgmr.msra.gmra.mxu1 %vm64_vm0, %v251_v10 }
 0x420   :  { %v572_v12 = vpop.f32.mrf.mxu1 }
 0x421   :  { %v343_v13 = vadd.f32 %v572_v12, %v523_v11 }
 0x422   :  { %v337_v14 = vpop.f32.mrf.mxu1 }
 0x423   :  { %v347_v15 = vmax.f32 %v343_v13, 0.0  ;;  %v338_v16 = vadd.f32 %v523_v11, %v337_v14 }
 0x425   :  { %v349_v17 = vadd.f32 %v347_v15, %v205_v40  ;;  %v346_v18 = vmax.f32 %v338_v16, 0.0 }
 0x427   :  { %v348_v19 = vadd.f32 %v346_v18, %v204_v42  ;;  %v353_v20 = vsel %vm64_vm0, %v349_v17, 0.0 }
 0x428   :  { %354 = vadd.xlane.f32.xlu1 %v353_v20 }
 0x429   :  { %v350_v21 = vsel %vm64_vm0, %v348_v19, 0.0 }
 0x42a   :  { %351 = vadd.xlane.f32.xlu0 %v350_v21 }
 0x4b1   :  { %v355_v22 = vpop.xlane.xlu1 %354 }
 0x4b2   :  { %v357_v23 = vmul.f32 0.03125, %v355_v22 }
 0x4b3   :  { %v352_v24 = vpop.xlane.xlu0 %351 }
 0x4b4   :  { %v359_v25 = vsub.f32 %v349_v17, %v357_v23  ;;  %v356_v26 = vmul.f32 0.03125, %v352_v24 }
 0x4b6   :  { %v358_v27 = vsub.f32 %v348_v19, %v356_v26  ;;  %v361_v28 = vmul.f32 %v359_v25, %v359_v25 }
 0x4b8   :  { %v365_v29 = vsel %vm64_vm0, %v361_v28, 0.0  ;;  %v360_v30 = vmul.f32 %v358_v27, %v358_v27 }
 0x4b9   :  { %366 = vadd.xlane.f32.xlu1 %v365_v29 }
 0x4ba   :  { %v362_v31 = vsel %vm64_vm0, %v360_v30, 0.0 }
 0x4bb   :  { %363 = vadd.xlane.f32.xlu0 %v362_v31 }
 0x542   :  { %v367_v36 = vpop.xlane.xlu1 %366 }
 0x543   :  { %v369_v37 = vmul.f32 0.03125, %v367_v36 }
 0x544   :  { %v364_v38 = vpop.xlane.xlu0 %363 }
 0x545   :  { %v371_v39 = vadd.f32 1e-05, %v369_v37  ;;  %v368_v40 = vmul.f32 0.03125, %v364_v38 }
 0x547   :  { %600 = vrsqrt.f32 %v371_v39  ;;  %v370_v41 = vadd.f32 1e-05, %v368_v40 }
 0x549   :  { %602 = vrsqrt.f32 %v370_v41 }
 0x554   :  { %v601_v42 = vpop.eup %600 }
 0x555   :  { %v375_v43 = vmul.f32 %v601_v42, %v359_v25 }
 0x556   :  { %v603_v45 = vpop.eup %602 }
 0x557   :  { %v374_v46 = vmul.f32 %v603_v45, %v358_v27  ;;  %v385_v47 = vmul.f32 %v526_v44, %v375_v43 }
 0x559   :  { %v384_v48 = vmul.f32 %v526_v44, %v374_v46  ;;  %v395_v51 = vadd.f32 %v528_v49, %v385_v47 }
 0x55b   :  { %v394_v50 = vadd.f32 %v528_v49, %v384_v48 }
 0x55d   :  { %581 = vmatprep.mubr.msk.f32.mxu0 %vm64_vm0, %v394_v50 }
 0x55e   :  { %582 = vmatmul.mubr.msk.f32.vlgmr.msra.gmra.mxu0 %vm64_vm0, %v395_v51 }
 0x61e   :  { %v583_v53 = vpop.f32.mrf.mxu0 }
 0x61f   :  { %v487_v54 = vadd.f32 %v583_v53, %v530_v52 }
 0x620   :  { %v481_v55 = vpop.f32.mrf.mxu0 }
 0x621   :  { %v491_v56 = vmax.f32 %v487_v54, 0.0  ;;  %v482_v57 = vadd.f32 %v530_v52, %v481_v55 }
 0x623   :  { %v493_v58 = vadd.f32 %v491_v56, %v349_v17  ;;  %v490_v59 = vmax.f32 %v482_v57, 0.0 }
 0x625   :  { %495 = vst.msk [vmem:[#allocation8 + $0x8] sm:$0xff] %vm64_vm0, %v493_v58  ;;  %v492_v60 = vadd.f32 %v490_v59, %v348_v19 }
 0x627   :  { %494 = vst.msk [vmem:[#allocation8] sm:$0xff] %vm64_vm0, %v492_v60 }
 0x628   :  { %675 = shalt.err (!%p672_p5)
}
 0x629   :  { %507 = dma.vmem_to_hbm [thread:$0]  %s502_s23, 256, %s792_s5, [#allocation4], %s694_s29, %s694_s29, %s695_s30  }
 0x62a   :  { %688 = dma.done.wait [#allocation4], 256  }
 0x62b   :  { %689 = vsyncadd [#allocation4], 4294967040 }
 0x62c   :  { %511 = vsyncpa [#allocation3], 1 }
 0x62d   :  { %512 = vsyncpa [#allocation6], 1 }
 0x62e   :  { %513 = vsyncpa [#allocation4], 1 }

</bundles_post_ra>
